<compile_context>
chip_gen: v6e
topology: v6e:2x2x1
jax: 0.10.0
libtpu: 0.0.40
codegen_flags: <defaults>
</compile_context>

<pallas_src>
import functools

import jax
import jax.numpy as jnp
from jax.experimental import pallas as pl
from jax.experimental.pallas import tpu as pltpu

LANES = 128          # lane (fast) dimension
ACC_ROWS = 8         # sublane dimension of the resident accumulator tile
NUM_SHARDS = 2       # leading "parallel" grid axis (v7x has 2 TensorCores)
MAX_BLOCK_ROWS = 4096  # (4096,128) f32 = 2 MiB/input/buffer -> ~8 MiB VMEM total


def _round_up(x, m):
    return ((x + m - 1) // m) * m


def _rmse_partial_kernel(yhat_ref, y_ref, o_ref, *, block_rows, valid_rows,
                         blocks_per_shard, needs_mask):
    c = pl.program_id(0)   # shard (TensorCore) index      -- "parallel"
    i = pl.program_id(1)   # reduction step within a shard -- "arbitrary"

    # Output block is resident across the reduction axis: init at step 0.
    @pl.when(i == 0)
    def _():
        o_ref[...] = jnp.zeros_like(o_ref)

    d = yhat_ref[...].astype(jnp.float32) - y_ref[...].astype(jnp.float32)
    sq = d * d

    if needs_mask:
        # Logical (unclamped) first row covered by this grid step; rows at or
        # beyond `valid_rows` hold garbage (Pallas boundary padding / clamped
        # blocks) and must not contribute.
        row0 = (c * blocks_per_shard + i) * block_rows
        row_ids = row0 + jax.lax.broadcasted_iota(
            jnp.int32, (block_rows, 1), 0)
        sq = jnp.where(row_ids < valid_rows, sq, 0.0)

    # (block_rows, 128) -> (block_rows/8, 8, 128); summing over axis 0 is pure
    # vreg adds into the resident (8, 128) accumulator (VPU only, no XLU).
    o_ref[...] += jnp.sum(
        sq.reshape(block_rows // ACC_ROWS, ACC_ROWS, LANES), axis=0)


def rmse_loss(yhat, y, *, max_block_rows=MAX_BLOCK_ROWS):
    """Equivalent of torch.sqrt(nn.MSELoss()(yhat, y)) -> scalar f32."""
    assert yhat.shape == y.shape, "MSELoss with default args requires equal shapes"
    assert max_block_rows % ACC_ROWS == 0

    n = int(yhat.size)
    yh = yhat.reshape(-1)
    yy = y.reshape(-1)

    # Only pad when the element count is not lane-aligned (rare); zero-padding
    # both operands contributes 0 to the SSE.
    pad = (-n) % LANES
    if pad:
        yh = jnp.pad(yh, (0, pad))
        yy = jnp.pad(yy, (0, pad))

    rows = (n + pad) // LANES
    yh2d = yh.reshape(rows, LANES)
    yy2d = yy.reshape(rows, LANES)

    block_rows = min(max_block_rows, _round_up(rows, ACC_ROWS))
    total_blocks = pl.cdiv(rows, block_rows)
    num_shards = min(NUM_SHARDS, total_blocks)
    blocks_per_shard = pl.cdiv(total_blocks, num_shards)
    # Masking needed iff the (num_shards x blocks_per_shard) grid over-covers.
    needs_mask = num_shards * blocks_per_shard * block_rows > rows

    if num_shards * blocks_per_shard == total_blocks:
        def in_map(c, i):
            return (c * blocks_per_shard + i, 0)
    else:
        # Some trailing grid steps would request fully out-of-range blocks;
        # clamp the DMA target (their contribution is masked to zero anyway).
        def in_map(c, i):
            return (jnp.minimum(c * blocks_per_shard + i, total_blocks - 1), 0)

    kernel = functools.partial(
        _rmse_partial_kernel,
        block_rows=block_rows,
        valid_rows=rows,
        blocks_per_shard=blocks_per_shard,
        needs_mask=needs_mask,
    )

    partials = pl.pallas_call(
        kernel,
        out_shape=jax.ShapeDtypeStruct((num_shards * ACC_ROWS, LANES),
                                       jnp.float32),
        grid_spec=pltpu.PrefetchScalarGridSpec(
            num_scalar_prefetch=0,
            grid=(num_shards, blocks_per_shard),
            in_specs=[
                pl.BlockSpec((block_rows, LANES), in_map),
                pl.BlockSpec((block_rows, LANES), in_map),
            ],
            out_specs=pl.BlockSpec((ACC_ROWS, LANES), lambda c, i: (c, 0)),
        ),
        compiler_params=pltpu.CompilerParams(
            # leading axis parallel (2 TCs on v7x), reduction axis arbitrary
            dimension_semantics=("parallel", "arbitrary"),
        ),
    )(yh2d, yy2d)

    # Final cross-lane/shard reduce, mean and sqrt (tiny epilogue).
    return jnp.sqrt(jnp.sum(partials) / jnp.float32(n))


def _ref_rmse(a, b):
    a = a.astype(jnp.float32)
    b = b.astype(jnp.float32)
    return jnp.sqrt(jnp.mean((a - b) ** 2))


if __name__ == "__main__":
    key = jax.random.PRNGKey(0)
    keys = jax.random.split(key, 8)

    # Primary check: NCHW inputs, like typical use of the PyTorch module.
    yhat = jax.random.normal(keys[0], (2, 4, 16, 16), dtype=jnp.float32)
    y = jax.random.normal(keys[1], (2, 4, 16, 16), dtype=jnp.float32)
    loss = rmse_loss(yhat, y)
    jax.block_until_ready(loss)
    assert jnp.allclose(loss, _ref_rmse(yhat, y), rtol=1e-5, atol=1e-6)

    # Multi-block + 2-shard ("parallel") path, exact coverage (no mask/clamp).
    l2 = rmse_loss(yhat, y, max_block_rows=8)
    jax.block_until_ready(l2)
    assert jnp.allclose(l2, _ref_rmse(yhat, y), rtol=1e-5, atol=1e-6)

    # Ragged element count -> lane pad + in-kernel row mask.
    a3 = jax.random.normal(keys[2], (3, 5, 7, 11), dtype=jnp.float32)
    b3 = jax.random.normal(keys[3], (3, 5, 7, 11), dtype=jnp.float32)
    l3 = rmse_loss(a3, b3, max_block_rows=8)
    jax.block_until_ready(l3)
    assert jnp.allclose(l3, _ref_rmse(a3, b3), rtol=1e-5, atol=1e-6)

    # Odd block count -> exercises the clamped index_map + full-block masking.
    a4 = jax.random.normal(keys[4], (1, 1, 18, 128), dtype=jnp.float32)
    b4 = jax.random.normal(keys[5], (1, 1, 18, 128), dtype=jnp.float32)
    l4 = rmse_loss(a4, b4, max_block_rows=8)
    jax.block_until_ready(l4)
    assert jnp.allclose(l4, _ref_rmse(a4, b4), rtol=1e-5, atol=1e-6)

    print("KERNEL_OK")
</pallas_src>

<mosaic_0001>
module attributes {stable_mosaic.version = 11 : i64} {
  func.func @_rmse_partial_kernel(%arg0: i32, %arg1: i32, %arg2: memref<16x128xf32, #tpu.memory_space<vmem>>, %arg3: memref<16x128xf32, #tpu.memory_space<vmem>>, %arg4: memref<8x128xf32, #tpu.memory_space<vmem>>) attributes {dimension_semantics = [#tpu.dimension_semantics<parallel>, #tpu.dimension_semantics<arbitrary>], iteration_bounds = array<i64: 1, 1>, scalar_prefetch = 0 : i64, scratch_operands = 0 : i64, tpu.core_type = #tpu.core_type<tc>, window_params = [{transform_indices = @transform_0, window_bounds = array<i64: 16, 128>}, {transform_indices = @transform_1, window_bounds = array<i64: 16, 128>}, {transform_indices = @transform_2, window_bounds = array<i64: 8, 128>}]} {
    %c0_i32 = arith.constant 0 : i32
    %0 = arith.cmpi eq, %arg1, %c0_i32 : i32
    %1 = arith.extui %0 : i1 to i32
    %c0_i32_0 = arith.constant 0 : i32
    %2 = arith.cmpi ne, %1, %c0_i32_0 : i32
    scf.if %2 {
      %cst_8 = arith.constant 0.000000e+00 : f32
      %12 = vector.broadcast %cst_8 : f32 to vector<8x128xf32>
      %c0_9 = arith.constant 0 : index
      %c0_10 = arith.constant 0 : index
      %13 = vector.load %arg4[%c0_9, %c0_10] : memref<8x128xf32, #tpu.memory_space<vmem>>, vector<8x128xf32>
      tpu.vector_store %arg4[%c0_9, %c0_10], %12 {strides = array<i32>} : memref<8x128xf32, #tpu.memory_space<vmem>>, vector<8x128xf32>,
    } else {
    }
    %c0 = arith.constant 0 : index
    %c0_1 = arith.constant 0 : index
    %3 = vector.load %arg2[%c0, %c0_1] : memref<16x128xf32, #tpu.memory_space<vmem>>, vector<16x128xf32>
    %c0_2 = arith.constant 0 : index
    %c0_3 = arith.constant 0 : index
    %4 = vector.load %arg3[%c0_2, %c0_3] : memref<16x128xf32, #tpu.memory_space<vmem>>, vector<16x128xf32>
    %5 = arith.subf %3, %4 : vector<16x128xf32>
    %6 = arith.mulf %5, %5 : vector<16x128xf32>
    %c0_4 = arith.constant 0 : index
    %c0_5 = arith.constant 0 : index
    %7 = vector.load %arg4[%c0_4, %c0_5] : memref<8x128xf32, #tpu.memory_space<vmem>>, vector<8x128xf32>
    %8 = vector.shape_cast %6 : vector<16x128xf32> to vector<2x8x128xf32>
    %cst = arith.constant dense<0.000000e+00> : vector<8x128xf32>
    %9 = vector.multi_reduction <add>, %8, %cst [0] : vector<2x8x128xf32> to vector<8x128xf32>
    %10 = arith.addf %7, %9 : vector<8x128xf32>
    %c0_6 = arith.constant 0 : index
    %c0_7 = arith.constant 0 : index
    %11 = vector.load %arg4[%c0_6, %c0_7] : memref<8x128xf32, #tpu.memory_space<vmem>>, vector<8x128xf32>
    tpu.vector_store %arg4[%c0_6, %c0_7], %10 {strides = array<i32>} : memref<8x128xf32, #tpu.memory_space<vmem>>, vector<8x128xf32>,
    return
  }
  func.func @transform_0(%arg0: i32, %arg1: i32) -> (i32, i32) {
    %c1_i32 = arith.constant 1 : i32
    %0 = arith.muli %arg0, %c1_i32 : i32
    %1 = arith.addi %0, %arg1 : i32
    %c0_i32 = arith.constant 0 : i32
    %c0_i32_0 = arith.constant 0 : i32
    return %1, %c0_i32 : i32, i32
  }
  func.func @transform_1(%arg0: i32, %arg1: i32) -> (i32, i32) {
    %c1_i32 = arith.constant 1 : i32
    %0 = arith.muli %arg0, %c1_i32 : i32
    %1 = arith.addi %0, %arg1 : i32
    %c0_i32 = arith.constant 0 : i32
    %c0_i32_0 = arith.constant 0 : i32
    return %1, %c0_i32 : i32, i32
  }
  func.func @transform_2(%arg0: i32, %arg1: i32) -> (i32, i32) {
    %c0_i32 = arith.constant 0 : i32
    %c0_i32_0 = arith.constant 0 : i32
    return %arg0, %c0_i32 : i32, i32
  }
}

</mosaic_0001>

<bundles_post_ra>
// kernel: tpu_custom_call.1
= control target key start
LH: loop header
LB: loop body
LE: loop exit
PB: predicated region body
PF: predicated region fallthrough
CT: control target
= control target key end

     0   :  { %7 = vsyncpa [#allocation3], 0  ;;  %s186_s0 = inlined_call_operand.hbm [shape: f32[16,128], index: 0, kind: input, shape index: {}]   ;;  %s187_s1 = inlined_call_operand.hbm [shape: f32[16,128], index: 1, kind: input, shape index: {}]   ;;  %s188_s2 = inlined_call_operand.hbm [shape: f32[8,128], index: 2, kind: output, shape index: {}]  }
   0x1   :  { %8 = vsyncpa [#allocation6], 0 }
   0x2   :  { %9 = vsyncpa [#allocation4], 0  ;;  %s157_s9 = smov [#allocation2]  }
   0x3   :  { %s19_s10 = sshll.u32 %s157_s9, 4  ;;  %s20_s10 = int_to_ptr.vmem [resolvable:$true] %s19_s10 }
   0x4   :  { %s99_s11 = scalar_lea.vmem %s20_s10, 256  ;;  %p104_p1 = scmp.lt.s32.totalorder %s20_s10, %s20_s10 }
   0x5   :  { %p100_p0 = scmp.ne.s32.totalorder %s20_s10, %s99_s11  ;;  %p105_p2 = scmp.lt.s32.totalorder %s99_s11, %s99_s11 }
   0x7   :  { %p106_p3 = por %p105_p2, %p104_p1 }
   0x9   :  { %p107_p4 = pnand %p106_p3, %p100_p0 }
   0xb   :  { %110 = shalt.err (!%p107_p4)
}
   0xc   :  { %s158_s12 = smov 128   ;;  %s159_s13 = smov 8  }
   0xd   :  { %25 = dma.hbm_to_vmem [thread:$0]  %s186_s0, 256, %s20_s10, [#allocation3], %s158_s12, %s158_s12, %s159_s13  }
   0xe   :  { %s160_s16 = smov [#allocation5]  }
   0xf   :  { %s35_s17 = sshll.u32 %s160_s16, 4  ;;  %s36_s17 = int_to_ptr.vmem [resolvable:$true] %s35_s17 }
  0x10   :  { %s119_s18 = scalar_lea.vmem %s36_s17, 256  ;;  %p124_p6 = scmp.lt.s32.totalorder %s36_s17, %s36_s17 }
  0x11   :  { %p120_p5 = scmp.ne.s32.totalorder %s36_s17, %s119_s18  ;;  %p125_p7 = scmp.lt.s32.totalorder %s119_s18, %s119_s18 }
  0x13   :  { %p126_p8 = por %p125_p7, %p124_p6 }
  0x15   :  { %p127_p9 = pnand %p126_p8, %p120_p5 }
  0x17   :  { %130 = shalt.err (!%p127_p9)
}
  0x18   :  { %41 = dma.hbm_to_vmem [thread:$0]  %s187_s1, 256, %s36_s17, [#allocation6], %s158_s12, %s158_s12, %s159_s13  }
  0x19   :  { %151 = dma.done.wait [#allocation3], 256  }
  0x1a   :  { %152 = vsyncadd [#allocation3], 4294967040 }
  0x1b   :  { %153 = dma.done.wait [#allocation6], 256  }
  0x1c   :  { %154 = vsyncadd [#allocation6], 4294967040  ;;  %v57_v0 = vld [vmem:[#allocation2] sm:$0xff]  ;;  %v58_v1 = vld [vmem:[#allocation2 + $0x8] sm:$0xff]  ;;  %s161_s0 = smov [#allocation7]  }
  0x1d   :  { %v59_v2 = vld [vmem:[#allocation5] sm:$0xff]  ;;  %v60_v3 = vld [vmem:[#allocation5 + $0x8] sm:$0xff]  ;;  %s75_s21 = sshll.u32 %s161_s0, 4  ;;  %s76_s21 = int_to_ptr.vmem [resolvable:$true] %s75_s21 }
  0x1e   :  { %v61_v4 = vsub.f32 %v57_v0, %v59_v2  ;;  %v62_v5 = vsub.f32 %v58_v1, %v60_v3  ;;  %s131_s22 = scalar_lea.vmem %s76_s21, 128  ;;  %p136_p11 = scmp.lt.s32.totalorder %s76_s21, %s76_s21 }
  0x1f   :  { %p132_p10 = scmp.ne.s32.totalorder %s76_s21, %s131_s22  ;;  %p137_p12 = scmp.lt.s32.totalorder %s131_s22, %s131_s22 }
  0x20   :  { %v63_v6 = vmul.f32 %v61_v4, %v61_v4  ;;  %v64_v7 = vmul.f32 %v62_v5, %v62_v5 }
  0x21   :  { %p138_p13 = por %p137_p12, %p136_p11 }
  0x22   :  { %v66_v8 = vadd.f32 %v64_v7, %v63_v6 }
  0x23   :  { %p139_p0 = pnand %p138_p13, %p132_p10 }
  0x24   :  { %68 = vst [vmem:[#allocation7] sm:$0xff] %v66_v8 }
  0x25   :  { %142 = shalt.err (!%p139_p0)
}
  0x26   :  { %78 = dma.vmem_to_hbm [thread:$0]  %s76_s21, 128, %s188_s2, [#allocation4]  }
  0x27   :  { %155 = dma.done.wait [#allocation4], 128  }
  0x28   :  { %156 = vsyncadd [#allocation4], 4294967168 }
  0x29   :  { %82 = vsyncpa [#allocation3], 1 }
  0x2a   :  { %83 = vsyncpa [#allocation6], 1 }
  0x2b   :  { %84 = vsyncpa [#allocation4], 1 }

</bundles_post_ra>
